<compile_context>
chip_gen: v6e
topology: v6e:2x2x1
jax: 0.10.0
libtpu: 0.0.40
codegen_flags: <defaults>
</compile_context>

<pallas_src>
import jax
import jax.numpy as jnp
from jax.experimental import pallas as pl
from jax.experimental.pallas import tpu as pltpu


def _mish_kernel(x_ref, o_ref):
    x = x_ref[...]
    xf = x.astype(jnp.float32)

    # Single transcendental: t = exp(-|x|) in (0, 1].  (EUP slot)
    t = jnp.exp(-jnp.abs(xf))
    t2 = t * t
    two_t = t + t

    pos = xf >= 0.0
    # tanh(softplus(x)) = num / den, den >= 1 always (no overflow anywhere).
    num = jnp.where(pos, 1.0 + two_t, two_t + t2)
    den = num + jnp.where(pos, t2 + t2, 2.0)

    # Approximate reciprocal on the EUP (separate bundle slot -> ~free).
    inv = pl.reciprocal(den, approx=True)
    if o_ref.dtype == jnp.float32:
        # One Newton-Raphson step (VPU) restores ~full f32 precision; skipped
        # for bf16/f16 outputs where ~12-bit accuracy is already enough.
        inv = inv * (2.0 - den * inv)

    o_ref[...] = (xf * (num * inv)).astype(o_ref.dtype)


def _mish_jnp(x):
    """Pure-jnp reference / tail epilogue (numerically stable softplus)."""
    xf = x.astype(jnp.float32)
    sp = jnp.maximum(xf, 0.0) + jnp.log1p(jnp.exp(-jnp.abs(xf)))
    return (xf * jnp.tanh(sp)).astype(x.dtype)


def _device_tuning():
    """Return (block_bytes, vmem_limit_bytes) tuned per TPU generation."""
    try:
        kind = jax.devices()[0].device_kind.lower()
    except Exception:
        kind = ""
    if "v7" in kind:
        # 8 MiB blocks (in+out double-buffered = 32 MiB); raise scoped VMEM
        # limit explicitly (64 MiB physical per TC) to leave headroom.
        return 8 * 1024 * 1024, 48 * 1024 * 1024
    if "v6" in kind:
        # 4 MiB blocks = 16 MiB double-buffered, within the 32 MiB default.
        return 4 * 1024 * 1024, None
    # v5e (16 MiB default scoped VMEM) and older/unknown chips: stay at 2 MiB.
    return 2 * 1024 * 1024, None


def mish(x):
    """Apply Mish elementwise. Accepts any shape; returns same shape/dtype."""
    orig_shape = x.shape
    dtype = x.dtype
    n = x.size
    if n == 0:
        return x

    x_flat = jnp.ravel(x)

    # Widest lane dimension (multiple of 128) that divides n exactly.
    width = 0
    for cand in (2048, 1024, 512, 256, 128):
        if n % cand == 0:
            width = cand
            break

    if width == 0:
        # Ragged size: kernel on the 128-aligned prefix, tiny jnp epilogue for
        # the (<128-element) tail -- avoids the full-tensor pad + slice passes.
        # TODO(synk): a fully fused ragged path (memory_space=pl.ANY + manual
        # make_async_copy with a masked tail store) would also remove the
        # remaining prefix slice/concatenate copies.
        prefix_len = (n // 128) * 128
        tail_out = _mish_jnp(x_flat[prefix_len:])
        if prefix_len == 0:
            out_flat = tail_out
        else:
            prefix_out = mish(x_flat[:prefix_len])
            out_flat = jnp.concatenate([prefix_out, tail_out])
        return out_flat.reshape(orig_shape)

    rows = n // width
    x2d = x_flat.reshape(rows, width)

    block_bytes, vmem_limit = _device_tuning()
    elem_bytes = jnp.dtype(dtype).itemsize
    br = max(16, (block_bytes // (width * elem_bytes)) // 16 * 16)

    MIN_STEPS = 4  # >= 2 blocks per TensorCore on v7x's 2-TC chip
    SUBLANE = 16   # covers f32 (8) and bf16/f16 (16) sublane tiling
    if rows > br:
        block_rows = br
    elif rows >= MIN_STEPS * SUBLANE:
        # Would otherwise be a 1-step grid: split so both cores get work.
        block_rows = pl.cdiv(pl.cdiv(rows, MIN_STEPS), SUBLANE) * SUBLANE
    else:
        block_rows = rows  # tiny tensor: single full-extent block
    grid = (pl.cdiv(rows, block_rows),)

    out = pl.pallas_call(
        _mish_kernel,
        out_shape=jax.ShapeDtypeStruct((rows, width), dtype),
        grid_spec=pltpu.PrefetchScalarGridSpec(
            num_scalar_prefetch=0,
            grid=grid,
            in_specs=[pl.BlockSpec((block_rows, width), lambda i: (i, 0))],
            out_specs=pl.BlockSpec((block_rows, width), lambda i: (i, 0)),
        ),
        compiler_params=pltpu.CompilerParams(
            dimension_semantics=("parallel",),
            vmem_limit_bytes=vmem_limit,
        ),
    )(x2d)

    return out.reshape(orig_shape)


if __name__ == "__main__":
    key = jax.random.PRNGKey(0)
    # NCHW input consistent with a typical conv feature map.
    x = jax.random.normal(key, (2, 4, 16, 16), dtype=jnp.float32) * 3.0

    y = jax.block_until_ready(mish(x))
    y_ref = _mish_jnp(x)
    assert y.shape == x.shape and y.dtype == x.dtype
    assert jnp.allclose(y, y_ref, atol=1e-5, rtol=1e-4), "f32 mismatch vs reference"

    # bf16 path (approx reciprocal without the Newton step).
    xb = x.astype(jnp.bfloat16)
    yb = jax.block_until_ready(mish(xb))
    assert yb.shape == xb.shape and yb.dtype == jnp.bfloat16
    assert jnp.allclose(yb.astype(jnp.float32), _mish_jnp(xb).astype(jnp.float32),
                        atol=5e-2, rtol=5e-2), "bf16 mismatch vs reference"

    # Ragged size exercises the prefix-kernel + tail-epilogue path.
    xr = jax.random.normal(jax.random.PRNGKey(0), (5, 7, 11), dtype=jnp.float32)
    yr = jax.block_until_ready(mish(xr))
    assert jnp.allclose(yr, _mish_jnp(xr), atol=1e-5, rtol=1e-4), "ragged mismatch"

    print("KERNEL_OK")
</pallas_src>

<mosaic_0001>
module attributes {stable_mosaic.version = 11 : i64} {
  func.func @_mish_kernel(%arg0: i32, %arg1: memref<1x2048xf32, #tpu.memory_space<vmem>>, %arg2: memref<1x2048xf32, #tpu.memory_space<vmem>>) attributes {dimension_semantics = [#tpu.dimension_semantics<parallel>], iteration_bounds = array<i64: 1>, scalar_prefetch = 0 : i64, scratch_operands = 0 : i64, tpu.core_type = #tpu.core_type<tc>, window_params = [{transform_indices = @transform_0, window_bounds = array<i64: 1, 2048>}, {transform_indices = @transform_1, window_bounds = array<i64: 1, 2048>}]} {
    %c0 = arith.constant 0 : index
    %c0_0 = arith.constant 0 : index
    %0 = vector.load %arg1[%c0, %c0_0] : memref<1x2048xf32, #tpu.memory_space<vmem>>, vector<1x2048xf32>
    %1 = math.absf %0 : vector<1x2048xf32>
    %cst = arith.constant 0.000000e+00 : f32
    %2 = vector.broadcast %cst : f32 to vector<1x2048xf32>
    %3 = arith.subf %2, %1 : vector<1x2048xf32>
    %4 = math.exp %3 : vector<1x2048xf32>
    %5 = arith.mulf %4, %4 : vector<1x2048xf32>
    %6 = arith.addf %4, %4 : vector<1x2048xf32>
    %cst_1 = arith.constant 0.000000e+00 : f32
    %7 = vector.broadcast %cst_1 : f32 to vector<1x2048xf32>
    %8 = arith.cmpf oge, %0, %7 : vector<1x2048xf32>
    %cst_2 = arith.constant 1.000000e+00 : f32
    %9 = vector.broadcast %cst_2 : f32 to vector<1x2048xf32>
    %10 = arith.addf %9, %6 : vector<1x2048xf32>
    %11 = arith.addf %6, %5 : vector<1x2048xf32>
    %12 = arith.select %8, %10, %11 : vector<1x2048xi1>, vector<1x2048xf32>
    %13 = arith.addf %5, %5 : vector<1x2048xf32>
    %cst_3 = arith.constant 2.000000e+00 : f32
    %14 = vector.broadcast %cst_3 : f32 to vector<1x2048xf32>
    %15 = arith.select %8, %13, %14 : vector<1x2048xi1>, vector<1x2048xf32>
    %16 = arith.addf %12, %15 : vector<1x2048xf32>
    %17 = tpu.reciprocal %16 {approx = true} : vector<1x2048xf32> -> vector<1x2048xf32>
    %18 = arith.mulf %16, %17 : vector<1x2048xf32>
    %cst_4 = arith.constant 2.000000e+00 : f32
    %19 = vector.broadcast %cst_4 : f32 to vector<1x2048xf32>
    %20 = arith.subf %19, %18 : vector<1x2048xf32>
    %21 = arith.mulf %17, %20 : vector<1x2048xf32>
    %22 = arith.mulf %12, %21 : vector<1x2048xf32>
    %23 = arith.mulf %0, %22 : vector<1x2048xf32>
    %c0_5 = arith.constant 0 : index
    %c0_6 = arith.constant 0 : index
    %24 = vector.load %arg2[%c0_5, %c0_6] : memref<1x2048xf32, #tpu.memory_space<vmem>>, vector<1x2048xf32>
    tpu.vector_store %arg2[%c0_5, %c0_6], %23 {strides = array<i32>} : memref<1x2048xf32, #tpu.memory_space<vmem>>, vector<1x2048xf32>,
    return
  }
  func.func @transform_0(%arg0: i32) -> (i32, i32) {
    %c0_i32 = arith.constant 0 : i32
    %c0_i32_0 = arith.constant 0 : i32
    return %arg0, %c0_i32 : i32, i32
  }
  func.func @transform_1(%arg0: i32) -> (i32, i32) {
    %c0_i32 = arith.constant 0 : i32
    %c0_i32_0 = arith.constant 0 : i32
    return %arg0, %c0_i32 : i32, i32
  }
}

</mosaic_0001>

<bundles_post_ra>
// kernel: tpu_custom_call.1
= control target key start
LH: loop header
LB: loop body
LE: loop exit
PB: predicated region body
PF: predicated region fallthrough
CT: control target
= control target key end

     0   :  { %6 = vsyncpa [#allocation3], 0  ;;  %s150_s0 = inlined_call_operand.hbm [shape: f32[1,2048], index: 0, kind: input, shape index: {}]   ;;  %s151_s1 = inlined_call_operand.hbm [shape: f32[1,2048], index: 1, kind: output, shape index: {}]  }
   0x1   :  { %7 = vsyncpa [#allocation4], 0  ;;  %s132_s6 = smov [#allocation2]  }
   0x2   :  { %s14_s7 = sshll.u32 %s132_s6, 4  ;;  %s15_s7 = int_to_ptr.vmem [resolvable:$true] %s14_s7 }
   0x3   :  { %s96_s8 = scalar_lea.vmem %s15_s7, 256  ;;  %p101_p1 = scmp.lt.s32.totalorder %s15_s7, %s15_s7 }
   0x4   :  { %p97_p0 = scmp.ne.s32.totalorder %s15_s7, %s96_s8  ;;  %p102_p2 = scmp.lt.s32.totalorder %s96_s8, %s96_s8 }
   0x6   :  { %p103_p3 = por %p102_p2, %p101_p1 }
   0x8   :  { %p104_p4 = pnand %p103_p3, %p97_p0 }
   0xa   :  { %107 = shalt.err (!%p104_p4)
}
   0xb   :  { %17 = dma.hbm_to_vmem [thread:$0]  %s150_s0, 256, %s15_s7, [#allocation3]  }
   0xc   :  { %128 = dma.done.wait [#allocation3], 256  }
   0xd   :  { %129 = vsyncadd [#allocation3], 4294967040  ;;  %v21_v0 = vld [vmem:[#allocation2] sm:$0xff]  ;;  %v22_v1 = vld [vmem:[#allocation2 + $0x8] sm:$0xff]  ;;  %s133_s0 = smov [#allocation5]  }
   0xe   :  { %v23_v2 = vand.u32 2147483647, %v21_v0  ;;  %v24_v3 = vand.u32 2147483647, %v22_v1  ;;  %vm35_vm0 = vcmp.ge.f32.partialorder %v21_v0, 0.0  ;;  %vm36_vm1 = vcmp.ge.f32.partialorder %v22_v1, 0.0 }
   0xf   :  { %s69_s11 = sshll.u32 %s133_s0, 4  ;;  %s70_s11 = int_to_ptr.vmem [resolvable:$true] %s69_s11 }
  0x10   :  { %v25_v4 = vsub.f32 0.0, %v23_v2  ;;  %v26_v5 = vsub.f32 0.0, %v24_v3  ;;  %s108_s12 = scalar_lea.vmem %s70_s11, 256  ;;  %p113_p6 = scmp.lt.s32.totalorder %s70_s11, %s70_s11 }
  0x11   :  { %p109_p5 = scmp.ne.s32.totalorder %s70_s11, %s108_s12  ;;  %p114_p7 = scmp.lt.s32.totalorder %s108_s12, %s108_s12 }
  0x12   :  { %v27_v6 = vmul.f32 1.442695, %v25_v4  ;;  %v29_v7 = vmul.f32 1.442695, %v26_v5 }
  0x13   :  { %p115_p8 = por %p114_p7, %p113_p6 }
  0x14   :  { %80 = vpow2.f32 %v27_v6 }
  0x15   :  { %82 = vpow2.f32 %v29_v7  ;;  %p116_p9 = pnand %p115_p8, %p109_p5 }
  0x21   :  { %v81_v8 = vpop.eup %80 }
  0x22   :  { %v83_v9 = vpop.eup %82  ;;  %v31_v10 = vmul.f32 %v81_v8, %v81_v8  ;;  %v33_v11 = vadd.f32 %v81_v8, %v81_v8 }
  0x23   :  { %v32_v12 = vmul.f32 %v83_v9, %v83_v9  ;;  %v34_v13 = vadd.f32 %v83_v9, %v83_v9 }
  0x24   :  { %v37_v14 = vadd.f32 1.0, %v33_v11  ;;  %v39_v15 = vadd.f32 %v33_v11, %v31_v10  ;;  %v43_v16 = vadd.f32 %v31_v10, %v31_v10 }
  0x25   :  { %v38_v17 = vadd.f32 1.0, %v34_v13  ;;  %v40_v18 = vadd.f32 %v34_v13, %v32_v12  ;;  %v44_v19 = vadd.f32 %v32_v12, %v32_v12 }
  0x26   :  { %v41_v20 = vsel %vm35_vm0, %v37_v14, %v39_v15  ;;  %v45_v21 = vsel %vm35_vm0, %v43_v16, 2.0 }
  0x27   :  { %v47_v22 = vadd.f32 %v45_v21, %v41_v20  ;;  %v42_v23 = vsel %vm36_vm1, %v38_v17, %v40_v18  ;;  %v46_v24 = vsel %vm36_vm1, %v44_v19, 2.0 }
  0x28   :  { %v48_v25 = vadd.f32 %v46_v24, %v42_v23 }
  0x29   :  { %84 = vrcp.f32 %v47_v22 }
  0x2a   :  { %86 = vrcp.f32 %v48_v25 }
  0x36   :  { %v85_v26 = vpop.eup %84 }
  0x37   :  { %v87_v27 = vpop.eup %86  ;;  %v51_v28 = vmul.f32 %v85_v26, %v47_v22 }
  0x38   :  { %v52_v29 = vmul.f32 %v87_v27, %v48_v25 }
  0x39   :  { %v53_v30 = vsub.f32 2.0, %v51_v28 }
  0x3a   :  { %v54_v31 = vsub.f32 2.0, %v52_v29 }
  0x3b   :  { %v55_v32 = vmul.f32 %v85_v26, %v53_v30 }
  0x3c   :  { %v56_v33 = vmul.f32 %v87_v27, %v54_v31 }
  0x3d   :  { %v57_v34 = vmul.f32 %v55_v32, %v41_v20 }
  0x3e   :  { %v58_v35 = vmul.f32 %v56_v33, %v42_v23 }
  0x3f   :  { %v59_v36 = vmul.f32 %v57_v34, %v21_v0 }
  0x40   :  { %v60_v37 = vmul.f32 %v58_v35, %v22_v1 }
  0x41   :  { %61 = vst [vmem:[#allocation5] sm:$0xff] %v59_v36 }
  0x42   :  { %62 = vst [vmem:[#allocation5 + $0x8] sm:$0xff] %v60_v37 }
  0x43   :  { %119 = shalt.err (!%p116_p9)
}
  0x44   :  { %72 = dma.vmem_to_hbm [thread:$0]  %s70_s11, 256, %s151_s1, [#allocation4]  }
  0x45   :  { %130 = dma.done.wait [#allocation4], 256  }
  0x46   :  { %131 = vsyncadd [#allocation4], 4294967040 }
  0x47   :  { %76 = vsyncpa [#allocation3], 1 }
  0x48   :  { %77 = vsyncpa [#allocation4], 1 }

</bundles_post_ra>
